<compile_context>
chip_gen: v7x
topology: tpu7x:2x2x1
jax: 0.10.0
libtpu: 0.0.40
codegen_flags: <defaults>
</compile_context>

<pallas_src>
import math

import jax
import jax.numpy as jnp
from jax.experimental import pallas as pl
from jax.experimental.pallas import tpu as pltpu

SQRT2_OVER_2 = math.sqrt(2.0) / 2.0

_TARGET_BLOCK_BYTES = 1024 * 1024  # per-array block target (mem-bound sweet spot)


def _fourier_fold_kernel(left_ref, right_ref, sum_ref, diff_ref):
    # Pure elementwise scaled add/sub; all layout work done by BlockSpecs + XLA glue.
    l = left_ref[...].astype(jnp.float32)
    r = right_ref[...].astype(jnp.float32)
    s = jnp.float32(SQRT2_OVER_2)
    sum_ref[...] = (s * (l + r)).astype(sum_ref.dtype)
    diff_ref[...] = (s * (l - r)).astype(diff_ref.dtype)


def _tiled_multiples(n, unit):
    """Divisors of n that are multiples of `unit` (ascending); [n] if none."""
    ds = [d for d in range(unit, n + 1, unit) if n % d == 0]
    return ds if ds else [n]


def _pick_tiles(rows, lane, itemsize):
    """Pick a (rows, lane) block for a 2-D grid over a (rows, lane) array."""
    # Sublane unit per dtype: a vreg row holds 8 f32 / 16 bf16 / 32 int8 sublanes.
    sub_unit = {4: 8, 2: 16, 1: 32}.get(itemsize, 8)
    tr_cands = _tiled_multiples(rows, sub_unit)   # sublane-legal row tiles
    tl_cands = _tiled_multiples(lane, 128)        # lane-legal lane tiles

    min_cfg = (tr_cands[0], tl_cands[0])          # always-legal fallback
    best_key, best = None, min_cfg
    for tr in tr_cands:
        for tl in tl_cands:
            blk_bytes = tr * tl * itemsize
            if blk_bytes > _TARGET_BLOCK_BYTES and (tr, tl) != min_cfg:
                continue                           # over budget (keep minimal fallback)
            nsteps = (rows // tr) * (lane // tl)
            key = (
                nsteps >= 2,                       # keep both v7x TensorCores fed
                tl == lane,                        # fully contiguous HBM slab per block
                nsteps % 2 == 0 or nsteps == 1,    # balanced 2-way split across TCs
                blk_bytes,                         # amortize ~0.35us per-step overhead
            )
            if best_key is None or key > best_key:
                best_key, best = key, (tr, tl)
    return best


@jax.jit
def flatten_and_permute_bchw_grid_to_fourier(im):
    """im: (B, C, H, W) NCHW.  Returns (sum, diff), each (B, H*W//2, C)."""
    B, C, H, W = im.shape
    if W % 2 != 0:
        raise NotImplementedError()
    half = W // 2
    rows = B * H
    lane = half * C
    itemsize = jnp.dtype(im.dtype).itemsize

    # Mirror pairing + channels-last relayout.  Column w of `left` pairs with
    # column W-1-w of the original image via the flip.  With allow_input_fusion
    # below, XLA may fuse these producers directly into the pallas_call
    # operands (no intermediate HBM round-trip); the kernel then writes its
    # outputs already in the final (B, H*W/2, C) memory layout, so only free
    # contiguous reshapes remain outside the kernel.
    left = jnp.transpose(im[:, :, :, :half], (0, 2, 3, 1)).reshape(rows, lane)
    right = jnp.transpose(jnp.flip(im[:, :, :, half:], axis=3),
                          (0, 2, 3, 1)).reshape(rows, lane)

    tr, tl = _pick_tiles(rows, lane, itemsize)
    block_bytes = tr * tl * itemsize
    # 2 inputs + 2 outputs, double-buffered = 8 live blocks; add headroom.
    vmem_needed = 8 * block_bytes + (1 << 20)
    vmem_limit = min(max(vmem_needed, 32 << 20), 64 << 20)  # <= v7x 64 MiB physical

    spec = pl.BlockSpec((tr, tl), lambda i, j: (i, j))
    out_sds = jax.ShapeDtypeStruct((rows, lane), im.dtype)
    nbytes = rows * lane * itemsize

    sums, diffs = pl.pallas_call(
        _fourier_fold_kernel,
        out_shape=(out_sds, out_sds),
        grid_spec=pltpu.PrefetchScalarGridSpec(
            num_scalar_prefetch=0,
            grid=(rows // tr, lane // tl),
            in_specs=[spec, spec],
            out_specs=[spec, spec],
        ),
        compiler_params=pltpu.CompilerParams(
            dimension_semantics=("parallel", "parallel"),
            allow_input_fusion=[True, True],
            vmem_limit_bytes=vmem_limit,
        ),
        cost_estimate=pl.CostEstimate(
            flops=4 * rows * lane,            # add + sub + 2 scales per pair
            transcendentals=0,
            bytes_accessed=4 * nbytes,        # read 2 operands, write 2 outputs
        ),
    )(left, right)

    # Free contiguous reshapes: (B*H, half*C) -> (B, H*half, C).
    return sums.reshape(B, H * half, C), diffs.reshape(B, H * half, C)


if __name__ == "__main__":
    key = jax.random.PRNGKey(0)
    B, C, H, W = 2, 4, 16, 16
    im = jax.random.normal(key, (B, C, H, W), dtype=jnp.float32)

    out_sum, out_diff = flatten_and_permute_bchw_grid_to_fourier(im)
    jax.block_until_ready((out_sum, out_diff))

    # Pure-JAX reference reproducing the PyTorch forward exactly.
    im_blc = jnp.transpose(im.reshape(B, C, H * W), (0, 2, 1))  # (B, L, C)
    idx = jnp.arange(H * W).reshape(H, W)
    left_idx = idx[:, : W // 2].reshape(-1)
    right_idx = idx[:, W // 2:][:, ::-1].reshape(-1)
    ref_sum = SQRT2_OVER_2 * (im_blc[:, left_idx] + im_blc[:, right_idx])
    ref_diff = SQRT2_OVER_2 * (im_blc[:, left_idx] - im_blc[:, right_idx])

    assert out_sum.shape == (B, H * W // 2, C)
    assert out_diff.shape == (B, H * W // 2, C)
    assert jnp.allclose(out_sum, ref_sum, atol=1e-6, rtol=1e-6)
    assert jnp.allclose(out_diff, ref_diff, atol=1e-6, rtol=1e-6)

    print("KERNEL_OK")
</pallas_src>

<mosaic_0001>
module attributes {stable_mosaic.version = 11 : i64} {
  func.func @_fourier_fold_kernel(%arg0: i32, %arg1: i32, %arg2: memref<16x32xf32, #tpu.memory_space<vmem>>, %arg3: memref<16x32xf32, #tpu.memory_space<vmem>>, %arg4: memref<16x32xf32, #tpu.memory_space<vmem>>, %arg5: memref<16x32xf32, #tpu.memory_space<vmem>>) attributes {dimension_semantics = [#tpu.dimension_semantics<parallel>, #tpu.dimension_semantics<parallel>], iteration_bounds = array<i64: 2, 1>, scalar_prefetch = 0 : i64, scratch_operands = 0 : i64, tpu.core_type = #tpu.core_type<tc>, window_params = [{transform_indices = @transform_0, window_bounds = array<i64: 16, 32>}, {transform_indices = @transform_1, window_bounds = array<i64: 16, 32>}, {transform_indices = @transform_2, window_bounds = array<i64: 16, 32>}, {transform_indices = @transform_3, window_bounds = array<i64: 16, 32>}]} {
    %c0 = arith.constant 0 : index
    %c0_0 = arith.constant 0 : index
    %0 = vector.load %arg2[%c0, %c0_0] : memref<16x32xf32, #tpu.memory_space<vmem>>, vector<16x32xf32>
    %c0_1 = arith.constant 0 : index
    %c0_2 = arith.constant 0 : index
    %1 = vector.load %arg3[%c0_1, %c0_2] : memref<16x32xf32, #tpu.memory_space<vmem>>, vector<16x32xf32>
    %2 = arith.addf %0, %1 : vector<16x32xf32>
    %cst = arith.constant 0.707106769 : f32
    %3 = vector.broadcast %cst : f32 to vector<16x32xf32>
    %4 = arith.mulf %3, %2 : vector<16x32xf32>
    %c0_3 = arith.constant 0 : index
    %c0_4 = arith.constant 0 : index
    %5 = vector.load %arg4[%c0_3, %c0_4] : memref<16x32xf32, #tpu.memory_space<vmem>>, vector<16x32xf32>
    tpu.vector_store %arg4[%c0_3, %c0_4], %4 {strides = array<i32>} : memref<16x32xf32, #tpu.memory_space<vmem>>, vector<16x32xf32>,
    %6 = arith.subf %0, %1 : vector<16x32xf32>
    %cst_5 = arith.constant 0.707106769 : f32
    %7 = vector.broadcast %cst_5 : f32 to vector<16x32xf32>
    %8 = arith.mulf %7, %6 : vector<16x32xf32>
    %c0_6 = arith.constant 0 : index
    %c0_7 = arith.constant 0 : index
    %9 = vector.load %arg5[%c0_6, %c0_7] : memref<16x32xf32, #tpu.memory_space<vmem>>, vector<16x32xf32>
    tpu.vector_store %arg5[%c0_6, %c0_7], %8 {strides = array<i32>} : memref<16x32xf32, #tpu.memory_space<vmem>>, vector<16x32xf32>,
    return
  }
  func.func @transform_0(%arg0: i32, %arg1: i32) -> (i32, i32) {
    %c0_i32 = arith.constant 0 : i32
    return %arg0, %arg1 : i32, i32
  }
  func.func @transform_1(%arg0: i32, %arg1: i32) -> (i32, i32) {
    %c0_i32 = arith.constant 0 : i32
    return %arg0, %arg1 : i32, i32
  }
  func.func @transform_2(%arg0: i32, %arg1: i32) -> (i32, i32) {
    %c0_i32 = arith.constant 0 : i32
    return %arg0, %arg1 : i32, i32
  }
  func.func @transform_3(%arg0: i32, %arg1: i32) -> (i32, i32) {
    %c0_i32 = arith.constant 0 : i32
    return %arg0, %arg1 : i32, i32
  }
}

</mosaic_0001>

<bundles_post_ra>
// kernel: flatten_and_permute_bchw_grid_to_fourier.1
= control target key start
LH: loop header
LB: loop body
LE: loop exit
PB: predicated region body
PF: predicated region fallthrough
CT: control target
= control target key end

     0   :  { %s497_s12 = smov 0   ;;  %s499_s13 = smov 0   ;;  %s536_s0 = inlined_call_operand.vmem [shape: f32[32,32], index: 0, kind: input, shape index: {}]   ;;  %s537_s1 = inlined_call_operand.vmem [shape: f32[32,32], index: 1, kind: input, shape index: {}]   ;;  %s538_s2 = inlined_call_operand.vmem [shape: f32[32,32], index: 2, kind: output, shape index: {0}]   ;;  %s539_s3 = inlined_call_operand.vmem [shape: f32[32,32], index: 3, kind: output, shape index: {1}]  }
   0x1   :  { %s501_s14 = smov 0  }
   0x2 LB: > { %s26_s15 = sadd.s32 1, %s471_s13  ;;  %p418_p0 = scmp.ge.s32.totalorder %s475_s14, 1  ;;  %s475_s14 = sphi %s501_s14, %s14_s14   ;;  %s471_s13 = sphi %s499_s13, %s541_s13   ;;  %s467_s12 = sphi %s497_s12, %s540_s12  }
   0x3   : > { %p28_p1 = scmp.ge.s32.totalorder %s26_s15, 2  ;;  %p178_p2 = scmp.lt.s32.totalorder %s475_s14, 3 }
   0x5   : > { %s543_s15 = smov (%p28_p1, %s26_s15), 0  ;;  %p179_p3 = pnand %p418_p0, %p178_p2 }
   0x6   : > { %s419_s16 = sshll.u32 (!%p179_p3), %s467_s12, 1  ;;  %vm268_vm0 = vcmask (!%p179_p3), 261120  }
   0x7   : > { %182 = sbr.rel (%p179_p3) target bundleno = 25 (0x19), region = 28  ;;  %p225_p4 = scmp.lt.s32.totalorder (!%p179_p3), %s419_s16, 3 }
   0xe   : > { %s545_s16 = smov (!%p225_p4, %s419_s16), 3 }
   0xf   : > { %s420_s17 = sshll.u32 %s545_s16, 3 }
  0x10   : > { %s231_s20 = scalar_lea.vmem %s536_s0, %s420_s17  ;;  %s240_s23 = scalar_lea.vmem %s537_s1, %s420_s17 }
  0x11   : > { %v260_v0 = vld [vmem:[%s231_s20] sm:$0xff]  ;;  %v261_v1 = vld [vmem:[%s231_s20 + $0x8] sm:$0xff]  ;;  %s249_s26 = scalar_lea.vmem %s538_s2, %s420_s17  ;;  %s258_s29 = scalar_lea.vmem %s539_s3, %s420_s17 }
  0x12   : > { %v262_v2 = vld [vmem:[%s240_s23] sm:$0xff]  ;;  %v263_v3 = vld [vmem:[%s240_s23 + $0x8] sm:$0xff] }
  0x13   : > { %v264_v4 = vadd.f32 %v262_v2, %v260_v0  ;;  %v271_v5 = vsub.f32 %v260_v0, %v262_v2  ;;  %v265_v6 = vadd.f32 %v263_v3, %v261_v1  ;;  %v272_v7 = vsub.f32 %v261_v1, %v263_v3 }
  0x15   : > { %v266_v8 = vmul.f32 0.70710677, %v264_v4  ;;  %v273_v9 = vmul.f32 0.70710677, %v271_v5  ;;  %v267_v10 = vmul.f32 0.70710677, %v265_v6 }
  0x16   : > { %v274_v11 = vmul.f32 0.70710677, %v272_v7 }
  0x17   : > { %269 = vst.msk [vmem:[%s249_s26] sm:$0xff] %vm268_vm0, %v266_v8  ;;  %275 = vst.msk [vmem:[%s258_s29] sm:$0xff] %vm268_vm0, %v273_v9 }
  0x18   : > { %270 = vst.msk [vmem:[%s249_s26 + $0x8] sm:$0xff] %vm268_vm0, %v267_v10  ;;  %276 = vst.msk [vmem:[%s258_s29 + $0x8] sm:$0xff] %vm268_vm0, %v274_v11 }
  0x19 PF: > { %s14_s14 = sadd.s32 1, %s475_s14   ;;  %s540_s12 = smov %s471_s13 }
  0x1a   : > { %p11_p5 = scmp.ge.s32.totalorder %s14_s14, 4   ;;  %s541_s13 = smov %s543_s15 }
  0x1c   :  { %13 = sbr.rel (!%p11_p5) target bundleno = 2 (0x2), region = 73 }

</bundles_post_ra>
